<compile_context>
chip_gen: v5e
topology: v5e:2x2
jax: 0.10.0
libtpu: 0.0.40
codegen_flags: <defaults>
</compile_context>

<pallas_src>
import jax
import jax.numpy as jnp
from jax.experimental import pallas as pl
from jax.experimental.pallas import tpu as pltpu

HID = 32                 # hidden width of the yd policy MLP (yd: R^2 -> R^4)
C0 = -0.873              # ZeroDynamics 'c' buffer: c = [C0, C1, 0, 0, 0]
C1 = -0.4604
DET_EPS = 1e-20          # |det| floor for the 2x2 pivot (guards inf/NaN)

_HI = jax.lax.Precision.HIGHEST


def cot_dynamics_kernel(zt_ref, wpack_ref, wj_ref, out_ref):
    # zt_ref   : [2, BT]   rows = (z1, z2); batch on lanes
    # wpack_ref: [HID, 8]  col0 = w1[:,0], col1 = w1[:,1], col2 = b1,
    #                      col3[:4] = b2, rest zero
    # wj_ref   : [12, HID] rows 0:4 = w2.T, 4:8 = w2.T*w1[0], 8:12 = w2.T*w1[1]
    # out_ref  : [3, BT]   rows = (z1_dot, z2_dot, power)
    z1 = zt_ref[0:1, :]                                # [1, BT]
    z2 = zt_ref[1:2, :]                                # [1, BT]

    wpack = wpack_ref[...]
    w1c0 = wpack[:, 0:1]                               # [HID, 1]
    w1c1 = wpack[:, 1:2]                               # [HID, 1]
    b1c = wpack[:, 2:3]                                # [HID, 1]
    b2c = wpack[0:4, 3:4]                              # [4, 1]
    wj = wj_ref[...]                                   # [12, HID]

    # ---- yd MLP forward + exact analytic Jacobian wrt (z1, z2) -------------
    pre = w1c0 * z1 + w1c1 * z2 + b1c                  # [HID, BT]  lane-dense
    h = jnp.tanh(pre)                                  # EUP
    g = 1.0 - h * h                                    # tanh'

    # w1 is folded into the output weights (host side), so the Jacobian needs
    # no per-element scaling of g and no lane concatenate: two tiny MXU dots.
    ydz = jnp.dot(wj[0:4, :], h, preferred_element_type=jnp.float32,
                  precision=_HI) + b2c                 # [4, BT]  yd(z)
    jmat = jnp.dot(wj[4:12, :], g, preferred_element_type=jnp.float32,
                   precision=_HI)                      # [8, BT]
    j0 = jmat[0:4, :]                                  # d yd / d z1
    j1 = jmat[4:8, :]                                  # d yd / d z2

    # ---- kappa2 = -dz_2(z1, z2, yd) -----------------------------------------
    # TODO(synk): dz_2 is an unprovided symbolic-dynamics fn; deterministic stand-in.
    dz2 = z1 + 0.1 * z2 + 0.01 * jnp.sum(ydz, axis=0, keepdims=True)    # [1, BT]
    kappa2 = -dz2

    # ---- Psi(z): structured 5x5 solve ---------------------------------------
    # M = [[row0], [H - outer(j0, c)]],  rhs = [z2 ; j1 * kappa2].
    # Rows 1..4 of M are e_{i+1} - j0_i*(C0 e0 + C1 e1) because H's rows are
    # unit vectors and c[2:] == 0, so p2..p4 eliminate analytically and only a
    # 2x2 system in (p0, p1) remains.  Holds for ANY row0.
    # TODO(synk): Psi_Z_intermediate_1 is an unprovided symbolic-dynamics fn;
    # deterministic stand-in for row0 = c + 0.01*[z1, yd(z)].
    r00 = C0 + 0.01 * z1                               # [1, BT]
    r01 = C1 + 0.01 * ydz[0:1, :]                      # [1, BT]
    r0r = 0.01 * ydz[1:4, :]                           # [3, BT]  (r02, r03, r04)

    a = (-C0) * j0                                     # [4, BT]  a_i = -j0_i*c0
    b = (-C1) * j0                                     # [4, BT]  b_i = -j0_i*c1
    rhs_t = j1 * kappa2                                # [4, BT]  rhs_1..rhs_4

    # Row 0 after eliminating p_{i+1} = rhs_{i+1} - a_i p0 - b_i p1 (i=1..3):
    A = r00 - jnp.sum(r0r * a[1:4, :], axis=0, keepdims=True)           # [1, BT]
    Bq = r01 - jnp.sum(r0r * b[1:4, :], axis=0, keepdims=True)          # [1, BT]
    R = z2 - jnp.sum(r0r * rhs_t[1:4, :], axis=0, keepdims=True)        # [1, BT]
    # Row 1:  a0 p0 + (1 + b0) p1 = rhs_1
    Cq = a[0:1, :]
    Dq = 1.0 + b[0:1, :]
    S = rhs_t[0:1, :]

    det = A * Dq - Bq * Cq
    det_mag = jnp.maximum(jnp.abs(det), DET_EPS)       # pivot guard
    det_safe = jnp.where(det < 0.0, -det_mag, det_mag)
    inv0 = pl.reciprocal(det_safe, approx=True)        # EUP slot (≈ free)
    inv_det = inv0 * (2.0 - det_safe * inv0)           # one Newton step -> ~f32

    p0 = (R * Dq - Bq * S) * inv_det                   # [1, BT]  psi[0]
    p1 = (A * S - Cq * R) * inv_det                    # [1, BT]  psi[1]
    p_rest = rhs_t[1:4, :] - a[1:4, :] * p0 - b[1:4, :] * p1            # [3, BT]

    # ---- zdot ----------------------------------------------------------------
    kappa1 = C0 * p0 + C1 * p1                         # psi^T c  (c[2:] == 0)

    # state = phi_inv(z) = [q ; psi]; only state[:, 6:10] == psi[1:5] =
    # [p1; p_rest] reaches the output, so the q half (dead compute) is dropped.
    # TODO(synk): restore q = inv([c;H]) @ [z1, yd] once the real
    # AmberDynamics.input / yd.time2_derivative / zddot consumers are provided;
    # deterministic stand-in for the actuation input u below.
    u0 = ydz[0:1, :] + 0.1 * p1                        # [1, BT]
    u_rest = ydz[1:4, :] + 0.1 * p_rest                # [3, BT]
    power = jnp.abs(p1 * u0 +
                    jnp.sum(p_rest * u_rest, axis=0, keepdims=True))    # [1, BT]

    # Lane-dense direct row writes (no width-3 lane concat / masked vst.msk).
    out_ref[0:1, :] = kappa1
    out_ref[1:2, :] = kappa2
    out_ref[2:3, :] = power
    # TODO(synk): densify the [1..4, BT] tail onto full 8-sublane vregs
    # (layout-aware fold of lane groups into sublanes) for a further VALU win.


def init_params():
    key = jax.random.PRNGKey(0)
    k1, k2, k3, k4 = jax.random.split(key, 4)
    w1 = jax.random.normal(k1, (2, HID), jnp.float32) * 0.5
    b1 = jax.random.normal(k2, (1, HID), jnp.float32) * 0.1
    w2 = jax.random.normal(k3, (HID, 4), jnp.float32) * 0.5
    b2 = jax.random.normal(k4, (1, 4), jnp.float32) * 0.1
    return dict(w1=w1, b1=b1, w2=w2, b2=b2)


def _pack_weights(params):
    w1, b1, w2, b2 = params["w1"], params["b1"], params["w2"], params["b2"]
    wpack = jnp.zeros((HID, 8), jnp.float32)
    wpack = wpack.at[:, 0].set(w1[0, :])
    wpack = wpack.at[:, 1].set(w1[1, :])
    wpack = wpack.at[:, 2].set(b1[0, :])
    wpack = wpack.at[0:4, 3].set(b2[0, :])
    w2t = w2.T                                         # [4, HID]
    # Fold w1 into the Jacobian output weights: j0 = (w2.T * w1[0]) @ g, etc.
    wj = jnp.concatenate(
        [w2t, w2t * w1[0][None, :], w2t * w1[1][None, :]], axis=0)      # [12, HID]
    return wpack.astype(jnp.float32), wj.astype(jnp.float32)


def _round_up(x, m):
    return ((x + m - 1) // m) * m


def cot_dynamics_forward_soa(zt2, params, *, block_b=4096):
    """SoA fast path.  zt2: [2, B] (rows z1, z2; batch on lanes) -> [3, B]
    (rows z1_dot, z2_dot, power).  No layout transposes."""
    assert block_b % 128 == 0, "lane-axis tile must be a multiple of 128"
    B = zt2.shape[1]
    B128 = _round_up(B, 128)
    if B128 <= block_b:
        # Small batch: single block, or two blocks when possible so both
        # TensorCores get work on v7x (extra grid step is ~600 cycles).
        block = B128 // 2 if (B128 >= 256 and (B128 // 2) % 128 == 0) else B128
    else:
        block = block_b
    B_pad = _round_up(B, block)

    wpack, wj = _pack_weights(params)
    zt2 = zt2.astype(jnp.float32)
    if B_pad != B:
        zt2 = jnp.pad(zt2, ((0, 0), (0, B_pad - B)))

    out_t = pl.pallas_call(
        cot_dynamics_kernel,
        out_shape=jax.ShapeDtypeStruct((3, B_pad), jnp.float32),
        grid_spec=pltpu.PrefetchScalarGridSpec(
            num_scalar_prefetch=0,
            grid=(B_pad // block,),
            in_specs=[
                pl.BlockSpec((2, block), lambda i: (0, i)),     # z (SoA, 2 rows only)
                pl.BlockSpec((HID, 8), lambda i: (0, 0)),       # packed w1/b1/b2
                pl.BlockSpec((12, HID), lambda i: (0, 0)),      # [w2.T; Wj0; Wj1]
            ],
            out_specs=pl.BlockSpec((3, block), lambda i: (0, i)),
        ),
        compiler_params=pltpu.CompilerParams(
            dimension_semantics=("parallel",)),
    )(zt2, wpack, wj)

    return out_t[:, :B]


def cot_dynamics_forward(aug_z, params, *, block_b=4096):
    """Module-convention interface: aug_z [B, 3] -> z_dot [B, 3].

    The two transposes below are host-side layout conversion only; callers
    that can provide/consume the SoA layout should use
    cot_dynamics_forward_soa and fuse the layout change upstream.
    """
    zt2 = jnp.transpose(aug_z[:, :2])                  # drop unused cost row
    out_t = cot_dynamics_forward_soa(zt2, params, block_b=block_b)
    return jnp.transpose(out_t)                        # back to [B, 3]


def _reference_forward(aug_z, params):
    """Pure-JAX reference with the same stand-ins and a generic batched 5x5
    solve (validates the structured in-kernel solve against jnp.linalg.solve)."""
    hi = jax.lax.Precision.HIGHEST
    w1, b1, w2, b2 = params["w1"], params["b1"], params["w2"], params["b2"]
    c = jnp.array([C0, C1, 0.0, 0.0, 0.0], jnp.float32)
    H = jnp.zeros((4, 5), jnp.float32)
    H = H.at[0, 1].set(1.0).at[1, 2].set(1.0).at[2, 3].set(1.0).at[3, 4].set(1.0)
    z1, z2 = aug_z[:, 0:1], aug_z[:, 1:2]
    h = jnp.tanh(z1 * w1[0:1] + z2 * w1[1:2] + b1)
    g = 1.0 - h * h
    ydz = jnp.dot(h, w2, precision=hi) + b2
    j0 = jnp.dot(g * w1[0:1], w2, precision=hi)
    j1 = jnp.dot(g * w1[1:2], w2, precision=hi)
    row0 = c[None, :] + 0.01 * jnp.concatenate([z1, ydz], axis=-1)
    dz2 = z1 + 0.1 * z2 + 0.01 * jnp.sum(ydz, axis=-1, keepdims=True)
    kappa2 = -dz2
    M = jnp.concatenate(
        [row0[:, None, :], H[None] - j0[:, :, None] * c[None, None, :]], axis=1)
    rhs = jnp.concatenate([z2, j1 * kappa2], axis=-1)[:, :, None]
    psi = jnp.linalg.solve(M, rhs)[:, :, 0]
    kappa1 = psi @ c[:, None]
    u = ydz + 0.1 * psi[:, 1:5]
    power = jnp.abs(jnp.sum(psi[:, 1:5] * u, axis=-1, keepdims=True))
    return jnp.concatenate([kappa1, kappa2, power], axis=-1)


if __name__ == "__main__":
    params = init_params()
    B = 512                          # small demo batch -> two 256-wide blocks
    aug_z = 0.3 * jax.random.normal(jax.random.PRNGKey(0), (B, 3), jnp.float32)

    out = cot_dynamics_forward(aug_z, params)
    out = jax.block_until_ready(out)
    assert out.shape == (B, 3) and out.dtype == jnp.float32
    assert bool(jnp.all(jnp.isfinite(out)))

    # HIGHEST-precision matmuls + Newton-refined reciprocal -> tight tolerance.
    ref = _reference_forward(aug_z, params)
    max_err = float(jnp.max(jnp.abs(out - ref)))
    assert max_err < 1e-3, f"kernel vs reference mismatch: max abs err {max_err}"

    print("KERNEL_OK")
</pallas_src>

<mosaic_0001>
module attributes {stable_mosaic.version = 11 : i64} {
  func.func @cot_dynamics_kernel(%arg0: i32, %arg1: memref<2x256xf32, #tpu.memory_space<vmem>>, %arg2: memref<32x8xf32, #tpu.memory_space<vmem>>, %arg3: memref<12x32xf32, #tpu.memory_space<vmem>>, %arg4: memref<3x256xf32, #tpu.memory_space<vmem>>) attributes {dimension_semantics = [#tpu.dimension_semantics<parallel>], iteration_bounds = array<i64: 2>, scalar_prefetch = 0 : i64, scratch_operands = 0 : i64, tpu.core_type = #tpu.core_type<tc>, window_params = [{transform_indices = @transform_0, window_bounds = array<i64: 2, 256>}, {pipeline_mode = #tpu.pipeline_mode<synchronous>, transform_indices = @transform_1, window_bounds = array<i64: 32, 8>}, {pipeline_mode = #tpu.pipeline_mode<synchronous>, transform_indices = @transform_2, window_bounds = array<i64: 12, 32>}, {transform_indices = @transform_3, window_bounds = array<i64: 3, 256>}]} {
    %c0 = arith.constant 0 : index
    %c0_0 = arith.constant 0 : index
    %0 = vector.load %arg1[%c0, %c0_0] : memref<2x256xf32, #tpu.memory_space<vmem>>, vector<1x256xf32>
    %c1 = arith.constant 1 : index
    %c0_1 = arith.constant 0 : index
    %1 = vector.load %arg1[%c1, %c0_1] : memref<2x256xf32, #tpu.memory_space<vmem>>, vector<1x256xf32>
    %c0_2 = arith.constant 0 : index
    %c0_3 = arith.constant 0 : index
    %2 = vector.load %arg2[%c0_2, %c0_3] : memref<32x8xf32, #tpu.memory_space<vmem>>, vector<32x8xf32>
    %3 = vector.extract_strided_slice %2 {offsets = [0, 0], sizes = [32, 1], strides = [1, 1]} : vector<32x8xf32> to vector<32x1xf32>
    %4 = vector.extract_strided_slice %2 {offsets = [0, 1], sizes = [32, 1], strides = [1, 1]} : vector<32x8xf32> to vector<32x1xf32>
    %5 = vector.extract_strided_slice %2 {offsets = [0, 2], sizes = [32, 1], strides = [1, 1]} : vector<32x8xf32> to vector<32x1xf32>
    %6 = vector.extract_strided_slice %2 {offsets = [0, 3], sizes = [4, 1], strides = [1, 1]} : vector<32x8xf32> to vector<4x1xf32>
    %c0_4 = arith.constant 0 : index
    %c0_5 = arith.constant 0 : index
    %7 = vector.load %arg3[%c0_4, %c0_5] : memref<12x32xf32, #tpu.memory_space<vmem>>, vector<12x32xf32>
    %8 = vector.broadcast %3 : vector<32x1xf32> to vector<32x256xf32>
    %9 = vector.broadcast %0 : vector<1x256xf32> to vector<32x256xf32>
    %10 = arith.mulf %8, %9 : vector<32x256xf32>
    %11 = vector.broadcast %4 : vector<32x1xf32> to vector<32x256xf32>
    %12 = vector.broadcast %1 : vector<1x256xf32> to vector<32x256xf32>
    %13 = arith.mulf %11, %12 : vector<32x256xf32>
    %14 = arith.addf %10, %13 : vector<32x256xf32>
    %15 = vector.broadcast %5 : vector<32x1xf32> to vector<32x256xf32>
    %16 = arith.addf %14, %15 : vector<32x256xf32>
    %17 = math.tanh %16 : vector<32x256xf32>
    %18 = arith.mulf %17, %17 : vector<32x256xf32>
    %cst = arith.constant 1.000000e+00 : f32
    %19 = vector.broadcast %cst : f32 to vector<32x256xf32>
    %20 = arith.subf %19, %18 : vector<32x256xf32>
    %21 = vector.extract_strided_slice %7 {offsets = [0, 0], sizes = [4, 32], strides = [1, 1]} : vector<12x32xf32> to vector<4x32xf32>
    %cst_6 = arith.constant dense<0.000000e+00> : vector<4x256xf32>
    %22 = tpu.matmul %21, %17, %cst_6 {dimension_numbers = #tpu.dot_dimension_numbers<[1], [0], [0], [1], [0, 0, 1, 1], [], []>, precision = #tpu.contract_precision<fp32>} : vector<4x32xf32>, vector<32x256xf32>, vector<4x256xf32> -> vector<4x256xf32>
    %23 = vector.broadcast %6 : vector<4x1xf32> to vector<4x256xf32>
    %24 = arith.addf %22, %23 : vector<4x256xf32>
    %25 = vector.extract_strided_slice %7 {offsets = [4, 0], sizes = [8, 32], strides = [1, 1]} : vector<12x32xf32> to vector<8x32xf32>
    %cst_7 = arith.constant dense<0.000000e+00> : vector<8x256xf32>
    %26 = tpu.matmul %25, %20, %cst_7 {dimension_numbers = #tpu.dot_dimension_numbers<[1], [0], [0], [1], [0, 0, 1, 1], [], []>, precision = #tpu.contract_precision<fp32>} : vector<8x32xf32>, vector<32x256xf32>, vector<8x256xf32> -> vector<8x256xf32>
    %27 = vector.extract_strided_slice %26 {offsets = [0, 0], sizes = [4, 256], strides = [1, 1]} : vector<8x256xf32> to vector<4x256xf32>
    %28 = vector.extract_strided_slice %26 {offsets = [4, 0], sizes = [4, 256], strides = [1, 1]} : vector<8x256xf32> to vector<4x256xf32>
    %cst_8 = arith.constant 1.000000e-01 : f32
    %29 = vector.broadcast %cst_8 : f32 to vector<1x256xf32>
    %30 = arith.mulf %29, %1 : vector<1x256xf32>
    %31 = arith.addf %0, %30 : vector<1x256xf32>
    %cst_9 = arith.constant dense<0.000000e+00> : vector<256xf32>
    %32 = vector.multi_reduction <add>, %24, %cst_9 [0] : vector<4x256xf32> to vector<256xf32>
    %33 = vector.shape_cast %32 : vector<256xf32> to vector<1x256xf32>
    %cst_10 = arith.constant 0.00999999977 : f32
    %34 = vector.broadcast %cst_10 : f32 to vector<1x256xf32>
    %35 = arith.mulf %34, %33 : vector<1x256xf32>
    %36 = arith.addf %31, %35 : vector<1x256xf32>
    %cst_11 = arith.constant 0.000000e+00 : f32
    %37 = vector.broadcast %cst_11 : f32 to vector<1x256xf32>
    %38 = arith.subf %37, %36 : vector<1x256xf32>
    %cst_12 = arith.constant 0.00999999977 : f32
    %39 = vector.broadcast %cst_12 : f32 to vector<1x256xf32>
    %40 = arith.mulf %39, %0 : vector<1x256xf32>
    %cst_13 = arith.constant -8.730000e-01 : f32
    %41 = vector.broadcast %cst_13 : f32 to vector<1x256xf32>
    %42 = arith.addf %41, %40 : vector<1x256xf32>
    %43 = vector.extract_strided_slice %24 {offsets = [0, 0], sizes = [1, 256], strides = [1, 1]} : vector<4x256xf32> to vector<1x256xf32>
    %cst_14 = arith.constant 0.00999999977 : f32
    %44 = vector.broadcast %cst_14 : f32 to vector<1x256xf32>
    %45 = arith.mulf %44, %43 : vector<1x256xf32>
    %cst_15 = arith.constant -4.604000e-01 : f32
    %46 = vector.broadcast %cst_15 : f32 to vector<1x256xf32>
    %47 = arith.addf %46, %45 : vector<1x256xf32>
    %48 = vector.extract_strided_slice %24 {offsets = [1, 0], sizes = [3, 256], strides = [1, 1]} : vector<4x256xf32> to vector<3x256xf32>
    %cst_16 = arith.constant 0.00999999977 : f32
    %49 = vector.broadcast %cst_16 : f32 to vector<3x256xf32>
    %50 = arith.mulf %49, %48 : vector<3x256xf32>
    %cst_17 = arith.constant 8.730000e-01 : f32
    %51 = vector.broadcast %cst_17 : f32 to vector<4x256xf32>
    %52 = arith.mulf %51, %27 : vector<4x256xf32>
    %cst_18 = arith.constant 4.604000e-01 : f32
    %53 = vector.broadcast %cst_18 : f32 to vector<4x256xf32>
    %54 = arith.mulf %53, %27 : vector<4x256xf32>
    %55 = vector.broadcast %38 : vector<1x256xf32> to vector<4x256xf32>
    %56 = arith.mulf %28, %55 : vector<4x256xf32>
    %57 = vector.extract_strided_slice %52 {offsets = [1, 0], sizes = [3, 256], strides = [1, 1]} : vector<4x256xf32> to vector<3x256xf32>
    %58 = arith.mulf %50, %57 : vector<3x256xf32>
    %cst_19 = arith.constant dense<0.000000e+00> : vector<256xf32>
    %59 = vector.multi_reduction <add>, %58, %cst_19 [0] : vector<3x256xf32> to vector<256xf32>
    %60 = vector.shape_cast %59 : vector<256xf32> to vector<1x256xf32>
    %61 = arith.subf %42, %60 : vector<1x256xf32>
    %62 = vector.extract_strided_slice %54 {offsets = [1, 0], sizes = [3, 256], strides = [1, 1]} : vector<4x256xf32> to vector<3x256xf32>
    %63 = arith.mulf %50, %62 : vector<3x256xf32>
    %cst_20 = arith.constant dense<0.000000e+00> : vector<256xf32>
    %64 = vector.multi_reduction <add>, %63, %cst_20 [0] : vector<3x256xf32> to vector<256xf32>
    %65 = vector.shape_cast %64 : vector<256xf32> to vector<1x256xf32>
    %66 = arith.subf %47, %65 : vector<1x256xf32>
    %67 = vector.extract_strided_slice %56 {offsets = [1, 0], sizes = [3, 256], strides = [1, 1]} : vector<4x256xf32> to vector<3x256xf32>
    %68 = arith.mulf %50, %67 : vector<3x256xf32>
    %cst_21 = arith.constant dense<0.000000e+00> : vector<256xf32>
    %69 = vector.multi_reduction <add>, %68, %cst_21 [0] : vector<3x256xf32> to vector<256xf32>
    %70 = vector.shape_cast %69 : vector<256xf32> to vector<1x256xf32>
    %71 = arith.subf %1, %70 : vector<1x256xf32>
    %72 = vector.extract_strided_slice %52 {offsets = [0, 0], sizes = [1, 256], strides = [1, 1]} : vector<4x256xf32> to vector<1x256xf32>
    %73 = vector.extract_strided_slice %54 {offsets = [0, 0], sizes = [1, 256], strides = [1, 1]} : vector<4x256xf32> to vector<1x256xf32>
    %cst_22 = arith.constant 1.000000e+00 : f32
    %74 = vector.broadcast %cst_22 : f32 to vector<1x256xf32>
    %75 = arith.addf %74, %73 : vector<1x256xf32>
    %76 = vector.extract_strided_slice %56 {offsets = [0, 0], sizes = [1, 256], strides = [1, 1]} : vector<4x256xf32> to vector<1x256xf32>
    %77 = arith.mulf %61, %75 : vector<1x256xf32>
    %78 = arith.mulf %66, %72 : vector<1x256xf32>
    %79 = arith.subf %77, %78 : vector<1x256xf32>
    %80 = math.absf %79 : vector<1x256xf32>
    %cst_23 = arith.constant 9.99999968E-21 : f32
    %81 = vector.broadcast %cst_23 : f32 to vector<1x256xf32>
    %82 = arith.maximumf %80, %81 : vector<1x256xf32>
    %cst_24 = arith.constant 0.000000e+00 : f32
    %83 = vector.broadcast %cst_24 : f32 to vector<1x256xf32>
    %84 = arith.cmpf olt, %79, %83 : vector<1x256xf32>
    %cst_25 = arith.constant 0.000000e+00 : f32
    %85 = vector.broadcast %cst_25 : f32 to vector<1x256xf32>
    %86 = arith.subf %85, %82 : vector<1x256xf32>
    %87 = arith.select %84, %86, %82 : vector<1x256xi1>, vector<1x256xf32>
    %88 = tpu.reciprocal %87 {approx = true} : vector<1x256xf32> -> vector<1x256xf32>
    %89 = arith.mulf %87, %88 : vector<1x256xf32>
    %cst_26 = arith.constant 2.000000e+00 : f32
    %90 = vector.broadcast %cst_26 : f32 to vector<1x256xf32>
    %91 = arith.subf %90, %89 : vector<1x256xf32>
    %92 = arith.mulf %88, %91 : vector<1x256xf32>
    %93 = arith.mulf %71, %75 : vector<1x256xf32>
    %94 = arith.mulf %66, %76 : vector<1x256xf32>
    %95 = arith.subf %93, %94 : vector<1x256xf32>
    %96 = arith.mulf %95, %92 : vector<1x256xf32>
    %97 = arith.mulf %61, %76 : vector<1x256xf32>
    %98 = arith.mulf %72, %71 : vector<1x256xf32>
    %99 = arith.subf %97, %98 : vector<1x256xf32>
    %100 = arith.mulf %99, %92 : vector<1x256xf32>
    %101 = vector.extract_strided_slice %56 {offsets = [1, 0], sizes = [3, 256], strides = [1, 1]} : vector<4x256xf32> to vector<3x256xf32>
    %102 = vector.extract_strided_slice %52 {offsets = [1, 0], sizes = [3, 256], strides = [1, 1]} : vector<4x256xf32> to vector<3x256xf32>
    %103 = vector.broadcast %96 : vector<1x256xf32> to vector<3x256xf32>
    %104 = arith.mulf %102, %103 : vector<3x256xf32>
    %105 = arith.subf %101, %104 : vector<3x256xf32>
    %106 = vector.extract_strided_slice %54 {offsets = [1, 0], sizes = [3, 256], strides = [1, 1]} : vector<4x256xf32> to vector<3x256xf32>
    %107 = vector.broadcast %100 : vector<1x256xf32> to vector<3x256xf32>
    %108 = arith.mulf %106, %107 : vector<3x256xf32>
    %109 = arith.subf %105, %108 : vector<3x256xf32>
    %cst_27 = arith.constant -8.730000e-01 : f32
    %110 = vector.broadcast %cst_27 : f32 to vector<1x256xf32>
    %111 = arith.mulf %110, %96 : vector<1x256xf32>
    %cst_28 = arith.constant -4.604000e-01 : f32
    %112 = vector.broadcast %cst_28 : f32 to vector<1x256xf32>
    %113 = arith.mulf %112, %100 : vector<1x256xf32>
    %114 = arith.addf %111, %113 : vector<1x256xf32>
    %115 = vector.extract_strided_slice %24 {offsets = [0, 0], sizes = [1, 256], strides = [1, 1]} : vector<4x256xf32> to vector<1x256xf32>
    %cst_29 = arith.constant 1.000000e-01 : f32
    %116 = vector.broadcast %cst_29 : f32 to vector<1x256xf32>
    %117 = arith.mulf %116, %100 : vector<1x256xf32>
    %118 = arith.addf %115, %117 : vector<1x256xf32>
    %119 = vector.extract_strided_slice %24 {offsets = [1, 0], sizes = [3, 256], strides = [1, 1]} : vector<4x256xf32> to vector<3x256xf32>
    %cst_30 = arith.constant 1.000000e-01 : f32
    %120 = vector.broadcast %cst_30 : f32 to vector<3x256xf32>
    %121 = arith.mulf %120, %109 : vector<3x256xf32>
    %122 = arith.addf %119, %121 : vector<3x256xf32>
    %123 = arith.mulf %100, %118 : vector<1x256xf32>
    %124 = arith.mulf %109, %122 : vector<3x256xf32>
    %cst_31 = arith.constant dense<0.000000e+00> : vector<256xf32>
    %125 = vector.multi_reduction <add>, %124, %cst_31 [0] : vector<3x256xf32> to vector<256xf32>
    %126 = vector.shape_cast %125 : vector<256xf32> to vector<1x256xf32>
    %127 = arith.addf %123, %126 : vector<1x256xf32>
    %128 = math.absf %127 : vector<1x256xf32>
    %c0_32 = arith.constant 0 : index
    %c0_33 = arith.constant 0 : index
    %129 = vector.load %arg4[%c0_32, %c0_33] : memref<3x256xf32, #tpu.memory_space<vmem>>, vector<1x256xf32>
    tpu.vector_store %arg4[%c0_32, %c0_33], %114 {strides = array<i32>} : memref<3x256xf32, #tpu.memory_space<vmem>>, vector<1x256xf32>,
    %c1_34 = arith.constant 1 : index
    %c0_35 = arith.constant 0 : index
    %130 = vector.load %arg4[%c1_34, %c0_35] : memref<3x256xf32, #tpu.memory_space<vmem>>, vector<1x256xf32>
    tpu.vector_store %arg4[%c1_34, %c0_35], %38 {strides = array<i32>} : memref<3x256xf32, #tpu.memory_space<vmem>>, vector<1x256xf32>,
    %c2 = arith.constant 2 : index
    %c0_36 = arith.constant 0 : index
    %131 = vector.load %arg4[%c2, %c0_36] : memref<3x256xf32, #tpu.memory_space<vmem>>, vector<1x256xf32>
    tpu.vector_store %arg4[%c2, %c0_36], %128 {strides = array<i32>} : memref<3x256xf32, #tpu.memory_space<vmem>>, vector<1x256xf32>,
    return
  }
  func.func @transform_0(%arg0: i32) -> (i32, i32) {
    %c0_i32 = arith.constant 0 : i32
    %c0_i32_0 = arith.constant 0 : i32
    return %c0_i32, %arg0 : i32, i32
  }
  func.func @transform_1(%arg0: i32) -> (i32, i32) {
    %c0_i32 = arith.constant 0 : i32
    %c0_i32_0 = arith.constant 0 : i32
    %c0_i32_1 = arith.constant 0 : i32
    return %c0_i32, %c0_i32_0 : i32, i32
  }
  func.func @transform_2(%arg0: i32) -> (i32, i32) {
    %c0_i32 = arith.constant 0 : i32
    %c0_i32_0 = arith.constant 0 : i32
    %c0_i32_1 = arith.constant 0 : i32
    return %c0_i32, %c0_i32_0 : i32, i32
  }
  func.func @transform_3(%arg0: i32) -> (i32, i32) {
    %c0_i32 = arith.constant 0 : i32
    %c0_i32_0 = arith.constant 0 : i32
    return %c0_i32, %arg0 : i32, i32
  }
}

</mosaic_0001>

<bundles_post_ra>
// kernel: tpu_custom_call.1
= control target key start
LH: loop header
LB: loop body
LE: loop exit
PB: predicated region body
PF: predicated region fallthrough
CT: control target
= control target key end

     0   :  { %8 = vsyncpa [#allocation3], 0  ;;  %s2069_s0 = inlined_call_operand.vmem [shape: f32[2,512], index: 0, kind: input, shape index: {}]   ;;  %s2070_s1 = inlined_call_operand.vmem [shape: f32[32,8], index: 1, kind: input, shape index: {}]   ;;  %s2071_s2 = inlined_call_operand.vmem [shape: f32[12,32], index: 2, kind: input, shape index: {}]   ;;  %s2072_s3 = inlined_call_operand.hbm [shape: f32[3,512], index: 3, kind: output, shape index: {}]  }
   0x1   :  { %10 = vsyncpa [#allocation3 + $0x1], 0  ;;  %s1593_s12 = smov 0   ;;  %s1595_s13 = smov 0  }
   0x2   :  { %s1597_s14 = smov 0   ;;  %s1599_s15 = smov 0  }
   0x3 LB: > { %s1614_s16 = sadd.s32 4294967295, %s1567_s15   ;;  %s1416_s17 = sadd.s32 4294967294, %s1567_s15   ;;  %s1567_s15 = sphi %s1599_s15, %s2080_s15   ;;  %s1563_s14 = sphi %s1597_s14, %s2079_s14   ;;  %s1559_s13 = sphi %s1595_s13, %s2078_s13   ;;  %s1555_s12 = sphi %s1593_s12, %s2077_s12  }
   0x4   : > { %s1618_s18 = sadd.s32 1, %s1567_s15   ;;  %s91_s19 = sadd.s32 1, %s1563_s14 }
   0x5   : > { %s88_s20 = ssub.s32 %s1567_s15, %s1618_s18  ;;  %p101_p0 = scmp.ne.s32.totalorder %s1563_s14, %s1559_s13 }
   0x6   : > { %p89_p1 = scmp.eq.s32.totalorder %s88_s20, 0  ;;  %p102_p2 = scmp.eq.s32.totalorder %s1614_s16, 1 }
   0x7   : > { %p107_p3 = scmp.ne.s32.totalorder %s1559_s13, %s1555_s12  ;;  %p108_p4 = scmp.eq.s32.totalorder %s1416_s17, 1 }
   0x8   : > { %s1629_s21 = scalar_select %p89_p1, %s1563_s14, %s91_s19  }
   0x9   : > { %p1631_p5 = por %p102_p2, %p101_p0  ;;  %p1635_p6 = por %p108_p4, %p107_p3 }
   0xa   : > { %p1419_p7 = scmp.ge.s32.totalorder %s1567_s15, 1  ;;  %p141_p8 = scmp.lt.s32.totalorder %s1567_s15, 3 }
   0xc   : > { %p142_p9 = pnand %p1419_p7, %p141_p8 }
   0xd   : > { %s1421_s5 = sshll.u32 (!%p142_p9), %s1614_s16, 1  ;;  %s162_s20 = sand.u32 (!%p142_p9), 1, %s1559_s13  }
   0xe   : > { %145 = sbr.rel (%p142_p9) target bundleno = 466 (0x1d2), region = 32  ;;  %p166_p10 = scmp.lt.s32.totalorder (!%p142_p9), %s1421_s5, 3 }
   0xf   : > { %s1420_s24 = sshll.u32 (!%p142_p9), %s162_s20, 3  ;;  %s1431_s26 = sshll.u32 (!%p142_p9), %s1614_s16, 3 }
  0x10   : > { %s1966_s25 = scalar_lea.vmem (!%p142_p9), [#allocation2], %s1420_s24  ;;  %s1352_s29 = scalar_lea.hbm (!%p142_p9), %s2072_s3, %s1431_s26 }
  0x11   : > { %s1354_s30 = sshll.u32 (!%p142_p9), %s1966_s25, 4  ;;  %s1356_s4 = sshll.u32 (!%p142_p9), %s1352_s29, 4  ;;  %s1355_s30 = int_to_ptr.vmem [resolvable:$true] %s1354_s30  ;;  %s1357_s4 = int_to_ptr.hbm [resolvable:$true] %s1356_s4 }
  0x12   : > { %s1341_s16 = scalar_lea.sflag (!%p142_p9), [#allocation3], %s162_s20 }
  0x13   : > { %v178_v0 = vld [vmem:[%s2070_s1 + $0x18] sm:$0xff]  ;;  %v177_v1 = vld [vmem:[%s2070_s1 + $0x10] sm:$0xff]  ;;  %v176_v2 = vld [vmem:[%s2070_s1 + $0x8] sm:$0xff]  ;;  %v1569_v3 = vmov 0   ;;  %v1570_v4 = vmov 1   ;;  %v1571_v6 = vmov 2  }
  0x14   : > { %1479 = vset.pattern.permute.xlu2 %v1569_v3  ;;  %1477 = vset.pattern.permute.xlu1 %v1569_v3  ;;  %v1653_v5 = vld [vmem:[%s2070_s1] sm:$0xff]  ;;  %s2082_s5 = smov (!%p166_p10, %s1421_s5), 3  ;;  %vm303_vm0 = vcmask 261120   ;;  %vm678_vm1 = vcmask 1043456   ;;  %vm1075_vm2 = vcmask 1040384   ;;  %vm1105_vm3 = vcmask 1042432  }
  0x15   : > { %1475 = vset.pattern.permute.xlu0 %v1569_v3  ;;  %193 = vperm.xlu1 %1477, %v177_v1   ;;  %s1422_s6 = sshll.u32 %s2082_s5, 1  ;;  %v1673_v40 = vld [vmem:[%s2071_s2] sm:$0xff]  ;;  %s1519_s5 = sshra.s32 %s1357_s4, 4  ;;  %s1520_s5 = int_to_ptr.hbm [resolvable:$true] %s1519_s5 }
  0x16   : > { %198 = vperm.xlu0 %1475, %v178_v0   ;;  %188 = vperm.xlu2 %1479, %v176_v2   ;;  %s169_s9 = scalar_lea.vmem %s2069_s0, %s1422_s6  ;;  %v305_v48 = vsel %vm303_vm0, %v1673_v40, 0  ;;  %s1521_s6 = scalar_lea.hbm %s1520_s5, 8 }
  0x17   : > { %v1662_v11 = vld [vmem:[%s169_s9] ss:$2 sm:$0x3]  ;;  %v1664_v12 = vld [vmem:[%s169_s9 + $0x1] ss:$2 sm:$0x3]  ;;  %p1522_p11 = scmp.ne.s32.totalorder %s1520_s5, %s1521_s6  ;;  %p1526_p0 = scmp.lt.s32.totalorder %s1520_s5, %s2072_s3 }
  0x18   : > { %v202_v14 = vperm.slane %v1662_v11, 0  ;;  %v231_v15 = vperm.slane %v1664_v12, 0  ;;  %v203_v16 = vperm.slane %v1662_v11, 1  ;;  %v232_v17 = vperm.slane %v1664_v12, 1  ;;  %s1525_s9 = scalar_lea.hbm %s2072_s3, 16 }
  0x19   : > { %v1679_v56 = vand.u32 4294901760, %v305_v48  ;;  %p1523_p12 = pnand %p1522_p11, %p1631_p5  ;;  %p1527_p1 = scmp.lt.s32.totalorder %s1525_s9, %s1521_s6 }
  0x1b   : > { %p1524_p13 = pneg %p1523_p12  ;;  %p1528_p2 = por %p1527_p1, %p1526_p0 }
  0x1d   : > { %1478 = vset.pattern.permute.xlu1 %v1570_v4  ;;  %p1529_p3 = pnand %p1528_p2, %p1524_p13 }
  0x1e   : > { %1476 = vset.pattern.permute.xlu0 %v1570_v4  ;;  %1480 = vset.pattern.permute.xlu2 %v1570_v4 }
  0x1f   : > { %227 = vperm.xlu0 %1476, %v178_v0   ;;  %223 = vperm.xlu1 %1478, %v177_v1  }
  0x20   : > { %219 = vperm.xlu2 %1480, %v176_v2  }
  0x27   : > { %1481 = vset.pattern.permute.xlu1 %v1571_v6  ;;  %215 = vperm.xlu0 %1476, %v1653_v5  }
  0x28   : > { %1482 = vset.pattern.permute.xlu2 %v1569_v3  ;;  %264 = vperm.xlu1 %1481, %v178_v0   ;;  %v1698_v3 = vsub.f32 %v305_v48, %v1679_v56  ;;  %v180_v48 = vld [vmem:[%s2071_s2 + $0x8] sm:$0xf] }
  0x29   : > { %183 = vperm.xlu2 %1482, %v1653_v5  }
  0x2f   : > { %1484 = vset.pattern.permute.xlu0 %v1571_v6 }
  0x30   : > { %260 = vperm.xlu1 %1481, %v177_v1   ;;  %252 = vperm.xlu0 %1484, %v1653_v5  }
  0x31   : > { %1483 = vset.pattern.permute.xlu2 %v1571_v6 }
  0x32   : > { %256 = vperm.xlu2 %1483, %v176_v2  }
  0x70   : > { %v189_v7 = vpop.permute.xlu2 %188 }
  0x71   : > { %v208_v18 = vmul.f32 %v202_v14, %v189_v7  ;;  %v209_v22 = vmul.f32 %v203_v16, %v189_v7 }
  0x7a   : > { %v220_v8 = vpop.permute.xlu2 %219 }
  0x7b   : > { %v237_v19 = vmul.f32 %v231_v15, %v220_v8  ;;  %v238_v23 = vmul.f32 %v232_v17, %v220_v8 }
  0x7d   : > { %v245_v24 = vadd.f32 %v237_v19, %v208_v18  ;;  %v246_v30 = vadd.f32 %v238_v23, %v209_v22 }
  0x83   : > { %v184_v13 = vpop.permute.xlu2 %183 }
  0x84   : > { %v206_v39 = vmul.f32 %v202_v14, %v184_v13  ;;  %v207_v44 = vmul.f32 %v203_v16, %v184_v13 }
  0x87   : > { %v194_v9 = vpop.permute.xlu1 %193 }
  0x88   : > { %v199_v10 = vpop.permute.xlu0 %198  ;;  %v210_v46 = vmul.f32 %v202_v14, %v194_v9  ;;  %v211_v47 = vmul.f32 %v203_v16, %v194_v9  ;;  %v1572_v9 = vmov 3  }
  0x89   : > { %v212_v28 = vmul.f32 %v202_v14, %v199_v10  ;;  %v213_v29 = vmul.f32 %v203_v16, %v199_v10  ;;  %1485 = vset.pattern.permute.xlu1 %v1572_v9  ;;  %1486 = vset.pattern.permute.xlu0 %v1572_v9  ;;  %v1712_v14 = vand.u32 4294901760, %v1698_v3 }
  0x8a   : > { %300 = vperm.xlu1 %1485, %v1653_v5  }
  0x8c   : > { %v257_v25 = vpop.permute.xlu2 %256 }
  0x8d   : > { %v269_v31 = vadd.f32 %v257_v25, %v245_v24  ;;  %v270_v36 = vadd.f32 %v257_v25, %v246_v30 }
  0x8f   : > { %1487 = vtanh.f32 %v269_v31 }
  0x91   : > { %v228_v20 = vpop.permute.xlu0 %227  ;;  %v224_v21 = vpop.permute.xlu1 %223 }
  0x92   : > { %v241_v26 = vmul.f32 %v231_v15, %v228_v20  ;;  %v242_v27 = vmul.f32 %v232_v17, %v228_v20  ;;  %v239_v41 = vmul.f32 %v231_v15, %v224_v21  ;;  %v240_v42 = vmul.f32 %v232_v17, %v224_v21 }
  0x94   : > { %v249_v33 = vadd.f32 %v241_v26, %v212_v28  ;;  %v250_v34 = vadd.f32 %v242_v27, %v213_v29  ;;  %v247_v49 = vadd.f32 %v239_v41, %v210_v46  ;;  %v248_v50 = vadd.f32 %v240_v42, %v211_v47 }
  0x95   : > { %v1677_v52 = vpop.eup %1487  ;;  %v330_v26 = vsub.f32 %v1698_v3, %v1712_v14 }
  0x96   : > { %v1701_v4 = vand.u32 4294901760, %v1677_v52 }
  0x98   : > { %v361_v16 = vsub.f32 %v1677_v52, %v1701_v4 }
  0x99   : > { %v216_v32 = vpop.permute.xlu0 %215 }
  0x9a   : > { %v265_v35 = vpop.permute.xlu1 %264  ;;  %v235_v43 = vmul.f32 %v231_v15, %v216_v32  ;;  %v236_v45 = vmul.f32 %v232_v17, %v216_v32  ;;  %v362_v28 = vand.u32 4294901760, %v361_v16 }
  0x9b   : > { %v273_v37 = vadd.f32 %v265_v35, %v249_v33  ;;  %v274_v38 = vadd.f32 %v265_v35, %v250_v34 }
  0x9c   : > { %v243_v51 = vadd.f32 %v235_v43, %v206_v39  ;;  %v244_v55 = vadd.f32 %v236_v45, %v207_v44  ;;  %v363_v41 = vsub.f32 %v361_v16, %v362_v28 }
  0x9d   : > { %1489 = vtanh.f32 %v273_v37  ;;  %v1765_v37 = vand.u32 4294901760, %v330_v26 }
  0x9e   : > { %1491 = vtanh.f32 %v274_v38 }
  0x9f   : > { %1493 = vtanh.f32 %v270_v36 }
  0xa2   : > { %v261_v53 = vpop.permute.xlu1 %260  ;;  %v253_v54 = vpop.permute.xlu0 %252 }
  0xa3   : > { %v1681_v57 = vpop.eup %1489  ;;  %v271_v58 = vadd.f32 %v261_v53, %v247_v49  ;;  %v272_v59 = vadd.f32 %v261_v53, %v248_v50  ;;  %v267_v60 = vadd.f32 %v253_v54, %v243_v51  ;;  %v268_v62 = vadd.f32 %v253_v54, %v244_v55 }
  0xa4   : > { %v1683_v61 = vpop.eup %1491  ;;  %v1686_v63 = vand.u32 4294901760, %v1681_v57  ;;  %v364_v49 = vand.u32 4294901760, %v363_v41  ;;  %v289_v50 = vmul.f32 %v1681_v57, %v1681_v57  ;;  %v679_v54 = vrot.slane %v1673_v40, 4 }
  0xa5   : > { %v1688_v0 = vpop.eup %1493  ;;  %1495 = vtanh.f32 %v271_v58  ;;  %v1691_v1 = vand.u32 4294901760, %v1683_v61  ;;  %v290_v53 = vmul.f32 %v1683_v61, %v1683_v61  ;;  %v680_v58 = vrot.slane %v180_v48, 4 }
  0xa6   : > { %1497 = vtanh.f32 %v272_v59  ;;  %320 = vmatpush.msra.mxu0 %v1686_v63  ;;  %420 = vmatpush.msra.mxu3 %v1686_v63  ;;  %v349_v2 = vsub.f32 %v1681_v57, %v1686_v63  ;;  %v1708_v8 = vand.u32 4294901760, %v1688_v0  ;;  %v285_v40 = vmul.f32 %v1677_v52, %v1677_v52 }
  0xa7   : > { %1499 = vtanh.f32 %v267_v60  ;;  %v1705_v6 = vsub.f32 %v1683_v61, %v1691_v1  ;;  %v297_v61 = vsub.f32 1.0, %v289_v50 }
  0xa8   : > { %1501 = vtanh.f32 %v268_v62  ;;  %391 = vmatpush.msra.mxu2 %v349_v2  ;;  %v350_v7 = vand.u32 4294901760, %v349_v2  ;;  %v1726_v20 = vsub.f32 %v1688_v0, %v1708_v8  ;;  %v298_v62 = vsub.f32 1.0, %v290_v53 }
  0xa9   : > { %v535_v13 = vand.u32 4294901760, %v1705_v6 }
  0xaa   : > { %v351_v10 = vsub.f32 %v349_v2, %v350_v7  ;;  %v547_v32 = vand.u32 4294901760, %v1726_v20  ;;  %v286_v2 = vmul.f32 %v1688_v0, %v1688_v0  ;;  %v1811_v0 = vand.u32 4294901760, %v297_v61 }
  0xab   : > { %v1715_v15 = vpop.eup %1495  ;;  %v536_v25 = vsub.f32 %v1705_v6, %v535_v13 }
  0xac   : > { %v1719_v17 = vpop.eup %1497  ;;  %v1722_v18 = vand.u32 4294901760, %v1715_v15  ;;  %v352_v19 = vand.u32 4294901760, %v351_v10  ;;  %v548_v44 = vsub.f32 %v1726_v20, %v547_v32  ;;  %v287_v57 = vmul.f32 %v1715_v15, %v1715_v15 }
  0xad   : > { %v1728_v21 = vpop.eup %1499  ;;  %v1731_v22 = vand.u32 4294901760, %v1719_v17  ;;  %v537_v35 = vand.u32 4294901760, %v536_v25  ;;  %v288_v60 = vmul.f32 %v1719_v17, %v1719_v17 }
  0xae   : > { %v1733_v5 = vpop.eup %1501  ;;  %322 = vmatpush.msra.mxu0 %v1722_v18  ;;  %353 = vmatpush.msra.mxu1 %v352_v19  ;;  %v355_v23 = vsub.f32 %v1715_v15, %v1722_v18  ;;  %v1739_v24 = vand.u32 4294901760, %v1728_v21  ;;  %v549_v51 = vand.u32 4294901760, %v548_v44  ;;  %v295_v9 = vsub.f32 1.0, %v287_v57 }
  0xaf   : > { %422 = vmatpush.msra.mxu3 %v1722_v18  ;;  %v1749_v27 = vsub.f32 %v1719_v17, %v1731_v22  ;;  %v1752_v29 = vand.u32 4294901760, %v1733_v5  ;;  %v283_v52 = vmul.f32 %v1728_v21, %v1728_v21  ;;  %v296_v10 = vsub.f32 1.0, %v288_v60 }
  0xb0   : > { %324 = vmatpush.msra.mxu0 %v1701_v4  ;;  %394 = vmatpush.msra.mxu2 %v355_v23  ;;  %v367_v30 = vsub.f32 %v1728_v21, %v1739_v24  ;;  %v356_v31 = vand.u32 4294901760, %v355_v23  ;;  %v293_v15 = vsub.f32 1.0, %v285_v40  ;;  %v284_v17 = vmul.f32 %v1733_v5, %v1733_v5 }
  0xb1   : > { %424 = vmatpush.msra.mxu3 %v1701_v4  ;;  %v541_v33 = vand.u32 4294901760, %v1749_v27  ;;  %v1762_v34 = vsub.f32 %v1733_v5, %v1752_v29  ;;  %v726_v21 = vsub.f32 %v297_v61, %v1811_v0 }
  0xb2   : > { %326 = vmatpush.msra.mxu0 %v1739_v24  ;;  %397 = vmatpush.msra.mxu2 %v361_v16  ;;  %v357_v36 = vsub.f32 %v355_v23, %v356_v31  ;;  %v368_v38 = vand.u32 4294901760, %v367_v30  ;;  %v294_v16 = vsub.f32 1.0, %v286_v2  ;;  %v1832_v5 = vand.u32 4294901760, %v293_v15 }
  0xb3   : > { %426 = vmatpush.msra.mxu3 %v1739_v24  ;;  %v542_v39 = vsub.f32 %v1749_v27, %v541_v33  ;;  %v553_v42 = vand.u32 4294901760, %v1762_v34  ;;  %332 = vmatmul.f32.vlgmr.msra.gmra.mxu0 %v1765_v37  ;;  %v292_v26 = vsub.f32 1.0, %v284_v17 }
  0xb4   : > { %449 = vmatpush.msrb.mxu0 %v350_v7  ;;  %400 = vmatpush.msra.mxu2 %v367_v30  ;;  %v358_v43 = vand.u32 4294901760, %v357_v36  ;;  %v369_v46 = vsub.f32 %v367_v30, %v368_v38  ;;  %v681_v7 = vsel %vm678_vm1, %v679_v54, %v680_v58  ;;  %v1841_v25 = vand.u32 4294901760, %v294_v16 }
  0xb5   : > { %538 = vmatpush.msrb.mxu3 %v537_v35  ;;  %v543_v45 = vand.u32 4294901760, %v542_v39  ;;  %v554_v47 = vsub.f32 %v1762_v34, %v553_v42  ;;  %403 = vmatmul.f32.vlgmr.msra.gmra.mxu2 %v1698_v3  ;;  %v682_v19 = vsel %vm303_vm0, %v681_v7, 0  ;;  %v1867_v35 = vand.u32 4294901760, %v292_v26 }
  0xb6   : > { %453 = vmatpush.msrb.mxu0 %v356_v31  ;;  %505 = vmatpush.msrb.mxu2 %v1691_v1  ;;  %v370_v55 = vand.u32 4294901760, %v369_v46  ;;  %v1834_v23 = vand.u32 4294901760, %v682_v19  ;;  %v727_v31 = vand.u32 4294901760, %v726_v21 }
  0xb7   : > { %359 = vmatpush.msra.mxu1 %v358_v43  ;;  %544 = vmatpush.msrb.mxu3 %v543_v45  ;;  %v555_v59 = vand.u32 4294901760, %v554_v47 }
  0xb8   : > { %430 = vmatmul.f32.vlgmr.msra.gmra.mxu3 %v1712_v14  ;;  %457 = vmatpush.msrb.mxu0 %v362_v28 }
  0xb9   : > { %507 = vmatpush.msrb.mxu2 %v1731_v22  ;;  %365 = vmatpush.msra.mxu1 %v364_v49 }
  0xba   : > { %550 = vmatpush.msrb.mxu3 %v549_v51  ;;  %461 = vmatpush.msrb.mxu0 %v368_v38 }
  0xbb   : > { %509 = vmatpush.msrb.mxu2 %v1708_v8  ;;  %371 = vmatpush.msra.mxu1 %v370_v55 }
  0xbc   : > { %556 = vmatpush.msrb.mxu3 %v555_v59  ;;  %576 = vmatpush.msra.mxu0 %v1705_v6  ;;  %v1825_v6 = vand.u32 4294901760, %v295_v9 }
  0xbd   : > { %373 = vmatmul.f32.vlgmr.msra.gmra.mxu1 %v1679_v56  ;;  %511 = vmatpush.msrb.mxu2 %v1752_v29 }
  0xbe   : > { %480 = vmatpush.msrb.mxu1 %v1686_v63  ;;  %665 = vmatpush.msra.mxu3 %v1691_v1  ;;  %v1815_v63 = vand.u32 4294901760, %v298_v62 }
  0xbf   : > { %579 = vmatpush.msra.mxu0 %v1749_v27  ;;  %634 = vmatpush.msra.mxu2 %v535_v13  ;;  %v291_v13 = vsub.f32 1.0, %v283_v52  ;;  %v732_v27 = vsub.f32 %v295_v9, %v1825_v6 }
  0xc0   : > { %482 = vmatpush.msrb.mxu1 %v1722_v18  ;;  %667 = vmatpush.msra.mxu3 %v1731_v22  ;;  %v1827_v18 = vand.u32 4294901760, %v296_v10 }
  0xc1   : > { %582 = vmatpush.msra.mxu0 %v1726_v20  ;;  %638 = vmatpush.msra.mxu2 %v541_v33  ;;  %v1849_v28 = vand.u32 4294901760, %v291_v13  ;;  %v738_v20 = vsub.f32 %v293_v15, %v1832_v5  ;;  %v1865_v33 = vsub.f32 %v294_v16, %v1841_v25 }
  0xc2   : > { %463 = vmatmul.f32.vlgmr.msrb.gmra.mxu0 %v1679_v56  ;;  %484 = vmatpush.msrb.mxu1 %v1701_v4  ;;  %v1839_v4 = vsub.f32 %v298_v62, %v1815_v63  ;;  %v1852_v30 = vsub.f32 %v296_v10, %v1827_v18 }
  0xc3   : > { %517 = vmatmul.f32.vlgmr.msrb.gmra.mxu2 %v1765_v37  ;;  %558 = vmatmul.f32.vlgmr.msrb.gmra.mxu3 %v1679_v56  ;;  %v728_v37 = vsub.f32 %v726_v21, %v727_v31  ;;  %v739_v38 = vand.u32 4294901760, %v738_v20  ;;  %v924_v39 = vand.u32 4294901760, %v1865_v33 }
  0xc4   : > { %669 = vmatpush.msra.mxu3 %v1708_v8  ;;  %585 = vmatpush.msra.mxu0 %v1762_v34  ;;  %v733_v34 = vand.u32 4294901760, %v732_v27  ;;  %v918_v36 = vand.u32 4294901760, %v1852_v30 }
  0xc5   : > { %642 = vmatpush.msra.mxu2 %v547_v32  ;;  %486 = vmatpush.msrb.mxu1 %v1739_v24  ;;  %v1859_v24 = vsub.f32 %v682_v19, %v1834_v23  ;;  %v912_v32 = vand.u32 4294901760, %v1839_v4  ;;  %v729_v45 = vand.u32 4294901760, %v728_v37  ;;  %v740_v46 = vsub.f32 %v738_v20, %v739_v38 }
  0xc6   : > { %671 = vmatpush.msra.mxu3 %v1752_v29  ;;  %697 = vmatpush.msrb.mxu0 %v1811_v0  ;;  %v919_v43 = vsub.f32 %v1852_v30, %v918_v36  ;;  %v925_v47 = vsub.f32 %v1865_v33, %v924_v39 }
  0xc7   : > { %605 = vmatpush.msra.mxu1 %v1691_v1  ;;  %646 = vmatpush.msra.mxu2 %v553_v42  ;;  %v744_v1 = vsub.f32 %v291_v13, %v1849_v28  ;;  %v1882_v41 = vand.u32 4294901760, %v1859_v24  ;;  %v1885_v42 = vsub.f32 %v292_v26, %v1867_v35  ;;  %v741_v51 = vand.u32 4294901760, %v740_v46 }
  0xc8   : > { %797 = vmatpush.msrb.mxu3 %v1811_v0  ;;  %488 = vmatmul.f32.vlgmr.msrb.gmra.mxu1 %v1679_v56  ;;  %v920_v50 = vand.u32 4294901760, %v919_v43  ;;  %v926_v53 = vand.u32 4294901760, %v925_v47  ;;  %v1054_v43 = vmul.f32 0.1, %v1664_v12 }
  0xc9   : > { %699 = vmatpush.msrb.mxu0 %v1825_v6  ;;  %768 = vmatpush.msrb.mxu2 %v726_v21  ;;  %v745_v44 = vand.u32 4294901760, %v744_v1  ;;  %v930_v48 = vand.u32 4294901760, %v1885_v42 }
  0xca   : > { %607 = vmatpush.msra.mxu1 %v1731_v22  ;;  %799 = vmatpush.msrb.mxu3 %v1825_v6  ;;  %v913_v22 = vsub.f32 %v1839_v4, %v912_v32 }
  0xcb   : > { %701 = vmatpush.msrb.mxu0 %v1832_v5  ;;  %771 = vmatpush.msrb.mxu2 %v732_v27  ;;  %v931_v55 = vsub.f32 %v1885_v42, %v930_v48 }
  0xcc   : > { %609 = vmatpush.msra.mxu1 %v1708_v8  ;;  %801 = vmatpush.msrb.mxu3 %v1832_v5  ;;  %v734_v8 = vsub.f32 %v732_v27, %v733_v34 }
  0xcd   : > { %588 = vmatmul.f32.vlgmr.msra.gmra.mxu0 %v1698_v3  ;;  %648 = vmatmul.f32.vlgmr.msra.gmra.mxu2 %v1679_v56  ;;  %v914_v3 = vand.u32 4294901760, %v913_v22  ;;  %v932_v59 = vand.u32 4294901760, %v931_v55 }
  0xce   : > { %673 = vmatmul.f32.vlgmr.msra.gmra.mxu3 %v1679_v56  ;;  %703 = vmatpush.msrb.mxu0 %v1849_v28  ;;  %v707_v56 = vsub.f32 %v1859_v24, %v1882_v41  ;;  %v735_v49 = vand.u32 4294901760, %v734_v8 }
  0xcf   : > { %774 = vmatpush.msrb.mxu2 %v738_v20  ;;  %611 = vmatpush.msra.mxu1 %v1752_v29  ;;  %v746_v29 = vsub.f32 %v744_v1, %v745_v44 }
  0xd0   : > { %803 = vmatpush.msrb.mxu3 %v1849_v28  ;;  %826 = vmatpush.msra.mxu0 %v727_v31  ;;  %v708_v54 = vand.u32 4294901760, %v707_v56 }
  0xd1   : > { %730 = vmatpush.msrb.mxu1 %v729_v45  ;;  %777 = vmatpush.msrb.mxu2 %v744_v1  ;;  %v747_v58 = vand.u32 4294901760, %v746_v29 }
  0xd2   : > { %915 = vmatpush.msra.mxu3 %v914_v3  ;;  %830 = vmatpush.msra.mxu0 %v733_v34 }
  0xd3   : > { %882 = vmatpush.msra.mxu2 %v1815_v63  ;;  %615 = vmatmul.f32.vlgmr.msra.gmra.mxu1 %v1712_v14 }
  0xd4   : > { %736 = vmatpush.msrb.mxu1 %v735_v49  ;;  %921 = vmatpush.msra.mxu3 %v920_v50 }
  0xd5   : > { %834 = vmatpush.msra.mxu0 %v739_v38  ;;  %884 = vmatpush.msra.mxu2 %v1827_v18 }
  0xd6   : > { %742 = vmatpush.msrb.mxu1 %v741_v51  ;;  %927 = vmatpush.msra.mxu3 %v926_v53  ;;  %v1331_v51 = vlaneseq }
  0xd7   : > { %838 = vmatpush.msra.mxu0 %v745_v44  ;;  %886 = vmatpush.msra.mxu2 %v1841_v25 }
  0xd8   : > { %709 = vmatmul.f32.vlgmr.msrb.gmra.mxu0 %v708_v54  ;;  %748 = vmatpush.msrb.mxu1 %v747_v58  ;;  %vm1961_vm4 = vcmp.lt.s32.totalorder %v1331_v51, 256 }
  0xd9   : > { %780 = vmatmul.f32.vlgmr.msrb.gmra.mxu2 %v1859_v24  ;;  %807 = vmatmul.f32.vlgmr.msrb.gmra.mxu3 %v1882_v41 }
  0xda   : > { %933 = vmatpush.msra.mxu3 %v932_v59  ;;  %953 = vmatpush.msrb.mxu0 %v1839_v4 }
  0xdb   : > { %857 = vmatpush.msra.mxu1 %v1811_v0  ;;  %888 = vmatpush.msra.mxu2 %v1867_v35 }
  0xdc   : > { %1042 = vmatpush.msrb.mxu3 %v1815_v63  ;;  %956 = vmatpush.msrb.mxu0 %v1852_v30 }
  0xdd   : > { %1011 = vmatpush.msrb.mxu2 %v912_v32  ;;  %859 = vmatpush.msra.mxu1 %v1825_v6 }
  0xde   : > { %1044 = vmatpush.msrb.mxu3 %v1827_v18  ;;  %750 = vmatmul.f32.vlgmr.msrb.gmra.mxu1 %v1834_v23 }
  0xdf   : > { %959 = vmatpush.msrb.mxu0 %v1865_v33  ;;  %1015 = vmatpush.msrb.mxu2 %v918_v36 }
  0xe0   : > { %861 = vmatpush.msra.mxu1 %v1832_v5  ;;  %1046 = vmatpush.msrb.mxu3 %v1841_v25 }
  0xe1   : > { %962 = vmatpush.msrb.mxu0 %v1885_v42  ;;  %1019 = vmatpush.msrb.mxu2 %v924_v39 }
  0xe2   : > { %863 = vmatpush.msra.mxu1 %v1849_v28  ;;  %1048 = vmatpush.msrb.mxu3 %v1867_v35 }
  0xe3   : > { %840 = vmatmul.f32.vlgmr.msra.gmra.mxu0 %v1834_v23  ;;  %894 = vmatmul.f32.vlgmr.msra.gmra.mxu2 %v708_v54 }
  0xe4   : > { %935 = vmatmul.f32.vlgmr.msra.gmra.mxu3 %v1834_v23  ;;  %982 = vmatpush.msrb.mxu1 %v1815_v63 }
  0xe5   : > { %1023 = vmatpush.msrb.mxu2 %v930_v48  ;;  %v1055_v48 = vadd.f32 %v1054_v43, %v1662_v11 }
  0xe6   : > { %984 = vmatpush.msrb.mxu1 %v1827_v18 }
  0xe7   : > { %865 = vmatmul.f32.vlgmr.msra.gmra.mxu1 %v1834_v23 }
  0xe8   : > { %986 = vmatpush.msrb.mxu1 %v1841_v25 }
  0xea   : > { %988 = vmatpush.msrb.mxu1 %v1867_v35 }
  0xeb   : > { %965 = vmatmul.f32.vlgmr.msrb.gmra.mxu0 %v1859_v24  ;;  %1025 = vmatmul.f32.vlgmr.msrb.gmra.mxu2 %v1834_v23 }
  0xec   : > { %1050 = vmatmul.f32.vlgmr.msrb.gmra.mxu3 %v1834_v23 }
  0xef   : > { %992 = vmatmul.f32.vlgmr.msrb.gmra.mxu1 %v1882_v41 }
  0xfc   : > { %v301_v14 = vpop.permute.xlu1 %300 }
 0x130   : > { %v333_v57 = vpop.f32.mrf.mxu0 }
 0x131   : > { %v334_v60 = vadd.f32 %v333_v57, %v301_v14 }
 0x138   : > { %v404_v40 = vpop.f32.mrf.mxu2 }
 0x13a   : > { %v374_v61 = vpop.f32.mrf.mxu1 }
 0x13b   : > { %v375_v62 = vadd.f32 %v374_v61, %v334_v60  ;;  %v431_v7 = vpop.f32.mrf.mxu3 }
 0x13d   : > { %v405_v2 = vadd.f32 %v404_v40, %v375_v62 }
 0x13f   : > { %v432_v9 = vadd.f32 %v431_v7, %v405_v2  ;;  %v464_v52 = vpop.f32.mrf.mxu0 }
 0x141   : > { %v465_v10 = vadd.f32 %v464_v52, %v432_v9 }
 0x145   : > { %v489_v0 = vpop.f32.mrf.mxu1 }
 0x146   : > { %v518_v15 = vpop.f32.mrf.mxu2  ;;  %v1936_v63 = vadd.f32 %v489_v0, %v465_v10  ;;  %v559_v17 = vpop.f32.mrf.mxu3 }
 0x147   : > { %v519_v16 = vadd.f32 %v518_v15, %v301_v14 }
 0x148   : > { %v1056_v6 = vsel %vm678_vm1, %v1936_v63, 0.0  ;;  %v1950_v53 = vmul.f32 0.01, %v1936_v63 }
 0x149   : > { %v560_v19 = vadd.f32 %v559_v17, %v519_v16  ;;  %v1057_v21 = vrot.slane %v1056_v6, 4 }
 0x14a   : > { %v589_v13 = vpop.f32.mrf.mxu0 }
 0x14b   : > { %v590_v18 = vadd.f32 %v589_v13, %v560_v19  ;;  %v1058_v25 = vadd.f32 %v1057_v21, %v1056_v6 }
 0x14d   : > { %v1059_v30 = vrot.slane %v1058_v25, 2 }
 0x14f   : > { %v1060_v32 = vadd.f32 %v1059_v30, %v1058_v25 }
 0x150   : > { %v616_v5 = vpop.f32.mrf.mxu1  ;;  %v649_v23 = vpop.f32.mrf.mxu2 }
 0x151   : > { %v617_v4 = vadd.f32 %v616_v5, %v590_v18  ;;  %v674_v27 = vpop.f32.mrf.mxu3  ;;  %v1061_v38 = vrot.slane %v1060_v32, 1 }
 0x153   : > { %v650_v26 = vadd.f32 %v649_v23, %v617_v4  ;;  %v1062_v44 = vadd.f32 %v1061_v38, %v1060_v32 }
 0x155   : > { %v1940_v28 = vadd.f32 %v674_v27, %v650_v26  ;;  %v710_v20 = vpop.f32.mrf.mxu0  ;;  %v1070_v49 = vmul.f32 0.01, %v1062_v44 }
 0x157   : > { %v1063_v31 = vsel %vm678_vm1, %v1940_v28, 0.0  ;;  %v1083_v25 = vmul.f32 0.01, %v1940_v28 }
 0x158   : > { %v1064_v24 = vrot.slane %v1063_v31, 4 }
 0x15a   : > { %v1065_v33 = vadd.f32 %v1064_v24, %v1063_v31 }
 0x15b   : > { %v751_v35 = vpop.f32.mrf.mxu1 }
 0x15c   : > { %v1066_v1 = vrot.slane %v1065_v33, 2  ;;  %v752_v34 = vadd.f32 %v751_v35, %v710_v20  ;;  %v781_v36 = vpop.f32.mrf.mxu2  ;;  %v808_v37 = vpop.f32.mrf.mxu3 }
 0x15e   : > { %v1067_v22 = vadd.f32 %v1066_v1, %v1065_v33  ;;  %v782_v39 = vadd.f32 %v781_v36, %v752_v34 }
 0x160   : > { %v1068_v41 = vrot.slane %v1067_v22, 1  ;;  %v809_v42 = vadd.f32 %v808_v37, %v782_v39  ;;  %v841_v8 = vpop.f32.mrf.mxu0 }
 0x162   : > { %v1069_v45 = vadd.f32 %v1068_v41, %v1067_v22  ;;  %v842_v46 = vadd.f32 %v841_v8, %v809_v42 }
 0x164   : > { %v1071_v3 = vmul.f32 0.01, %v1069_v45  ;;  %v866_v47 = vpop.f32.mrf.mxu1 }
 0x165   : > { %v867_v56 = vadd.f32 %v866_v47, %v842_v46 }
 0x166   : > { %v1074_v50 = vrot.slane %v1071_v3, 7  ;;  %v895_v29 = vpop.f32.mrf.mxu2 }
 0x167   : > { %v1952_v54 = vmul.f32 0.873, %v867_v56  ;;  %v1954_v55 = vmul.f32 0.4604, %v867_v56  ;;  %v936_v58 = vpop.f32.mrf.mxu3 }
 0x168   : > { %v1076_v59 = vsel %vm1075_vm2, %v1070_v49, %v1074_v50  ;;  %v937_v14 = vadd.f32 %v936_v58, %v895_v29  ;;  %v966_v57 = vpop.f32.mrf.mxu0 }
 0x169   : > { %v1078_v60 = vadd.f32 %v1076_v59, %v1055_v48  ;;  %v1097_v61 = vmul.f32 %v1952_v54, %v1950_v53  ;;  %v1126_v40 = vmul.f32 %v1954_v55, %v1950_v53 }
 0x16a   : > { %v967_v52 = vadd.f32 %v966_v57, %v937_v14 }
 0x16b   : > { %v1079_v2 = vsub.f32 0.0, %v1078_v60  ;;  %v1101_v7 = vrot.slane %v1097_v61, 1  ;;  %v1130_v9 = vrot.slane %v1126_v40, 1  ;;  %v1080_v60 = vmul.f32 0.01, %v1662_v11 }
 0x16c   : > { %v993_v10 = vpop.f32.mrf.mxu1 }
 0x16d   : > { %v1091_v0 = vperm.slane %v1079_v2, 0  ;;  %v1134_v15 = vsel %vm1105_vm3, %v1130_v9, 0.0  ;;  %v994_v16 = vadd.f32 %v993_v10, %v967_v52  ;;  %1424 = vst.msk [vmem:[%s1966_s25 + $0x1] ss:$4 sm:$0x3] %vm1961_vm4, %v1079_v2  ;;  %v1106_v13 = vsel %vm1105_vm3, %v1101_v7, 0.0 }
 0x16e   : > { %v1135_v17 = vrot.slane %v1134_v15, 4  ;;  %v1026_v19 = vpop.f32.mrf.mxu2  ;;  %v1092_v5 = vperm.slane %v1079_v2, 1  ;;  %v1107_v26 = vrot.slane %v1106_v13, 4 }
 0x16f   : > { %v1971_v6 = vmul.f32 %v1091_v0, %v867_v56  ;;  %v1027_v18 = vadd.f32 %v1026_v19, %v994_v16  ;;  %v1051_v21 = vpop.f32.mrf.mxu3 }
 0x170   : > { %v1136_v27 = vadd.f32 %v1135_v17, %v1134_v15  ;;  %v1108_v34 = vadd.f32 %v1107_v26, %v1106_v13  ;;  %v1081_v17 = vadd.f32 -0.873, %v1080_v60  ;;  %v1084_v13 = vadd.f32 -0.4604, %v1950_v53 }
 0x171   : > { %v1152_v23 = vrot.slane %v1971_v6, 4  ;;  %1219 = vst [vmem:[#allocation1] sm:$0xff] %v1971_v6  ;;  %v1052_v4 = vadd.f32 %v1051_v21, %v1027_v18  ;;  %v1085_v18 = vadd.f32 -0.4604, %v1083_v25 }
 0x172   : > { %v1137_v36 = vrot.slane %v1136_v27, 2  ;;  %v1109_v44 = vrot.slane %v1108_v34, 2 }
 0x173   : > { %v1156_v30 = vmul.f32 %v1152_v23, %v1950_v53  ;;  %v1980_v20 = vmul.f32 0.873, %v1052_v4  ;;  %v1982_v31 = vmul.f32 0.4604, %v1052_v4  ;;  %v1984_v24 = vmul.f32 %v1092_v5, %v1052_v4 }
 0x174   : > { %v1138_v47 = vadd.f32 %v1137_v36, %v1136_v27  ;;  %v1110_v29 = vadd.f32 %v1109_v44, %v1108_v34 }
 0x175   : > { %v1160_v32 = vrot.slane %v1156_v30, 1  ;;  %v1098_v33 = vmul.f32 %v1980_v20, %v1083_v25  ;;  %v1127_v35 = vmul.f32 %v1982_v31, %v1083_v25  ;;  %v1153_v1 = vrot.slane %v1984_v24, 4  ;;  %1220 = vst [vmem:[#allocation1 + $0x9] sm:$0xff] %v1984_v24 }
 0x176   : > { %v1139_v59 = vrot.slane %v1138_v47, 1  ;;  %v1111_v7 = vrot.slane %v1110_v29, 1  ;;  %v1185_v10 = vadd.f32 1.0, %v1982_v31 }
 0x177   : > { %v1164_v37 = vsel %vm1105_vm3, %v1160_v32, 0.0  ;;  %v1102_v38 = vrot.slane %v1098_v33, 1  ;;  %v1131_v22 = vrot.slane %v1127_v35, 1  ;;  %v1157_v39 = vmul.f32 %v1153_v1, %v1083_v25 }
 0x178   : > { %v1165_v41 = vrot.slane %v1164_v37, 4  ;;  %v1140_v0 = vadd.f32 %v1139_v59, %v1138_v47  ;;  %v1112_v4 = vadd.f32 %v1111_v7, %v1110_v29  ;;  %v1188_v27 = vrot.slane %v1185_v10, 7 }
 0x179   : > { %v1113_v42 = vsel %vm1105_vm3, %v1102_v38, 0.0  ;;  %v1141_v8 = vsel %vm1105_vm3, %v1131_v22, 0.0  ;;  %v1161_v43 = vrot.slane %v1157_v39, 1  ;;  %v1184_v35 = vadd.f32 1.0, %v1954_v55 }
 0x17a   : > { %v1166_v45 = vadd.f32 %v1165_v41, %v1164_v37  ;;  %v1114_v46 = vrot.slane %v1113_v42, 4  ;;  %v1142_v3 = vrot.slane %v1141_v8, 4  ;;  %v1148_v30 = vsub.f32 %v1084_v13, %v1140_v0 }
 0x17b   : > { %v1171_v56 = vsel %vm1105_vm3, %v1161_v43, 0.0  ;;  %v1189_v53 = vsel %vm1075_vm2, %v1184_v35, %v1188_v27 }
 0x17c   : > { %v1115_v48 = vadd.f32 %v1114_v46, %v1113_v42  ;;  %v1143_v49 = vadd.f32 %v1142_v3, %v1141_v8  ;;  %v1172_v50 = vrot.slane %v1171_v56, 4  ;;  %v1167_v51 = vrot.slane %v1166_v45, 2  ;;  %v1222_v60 = vld [vmem:[#allocation1 + $0x4] ss:$9 sm:$0xff] }
 0x17d   : > { %v1192_v25 = vmul.f32 %v1148_v30, %v1952_v54 }
 0x17e   : > { %v1116_v58 = vrot.slane %v1115_v48, 2  ;;  %v1144_v14 = vrot.slane %v1143_v49, 2  ;;  %v1173_v57 = vadd.f32 %v1172_v50, %v1171_v56  ;;  %v1168_v9 = vadd.f32 %v1167_v51, %v1166_v45 }
 0x180   : > { %v1117_v61 = vadd.f32 %v1116_v58, %v1115_v48  ;;  %v1145_v40 = vadd.f32 %v1144_v14, %v1143_v49  ;;  %v1174_v2 = vrot.slane %v1173_v57, 2  ;;  %v1169_v11 = vrot.slane %v1168_v9, 1 }
 0x182   : > { %v1118_v52 = vrot.slane %v1117_v61, 1  ;;  %v1146_v15 = vrot.slane %v1145_v40, 1  ;;  %v1175_v16 = vadd.f32 %v1174_v2, %v1173_v57  ;;  %v1170_v22 = vadd.f32 %v1169_v11, %v1168_v9 }
 0x183   : > { %v1210_v57 = vmul.f32 %v1152_v23, %v1148_v30 }
 0x184   : > { %v1119_v19 = vadd.f32 %v1118_v52, %v1117_v61  ;;  %v1147_v21 = vadd.f32 %v1146_v15, %v1145_v40  ;;  %v1176_v5 = vrot.slane %v1175_v16, 1 }
 0x186   : > { %v1122_v26 = vrot.slane %v1119_v19, 7  ;;  %v1149_v32 = vsub.f32 %v1085_v18, %v1147_v21  ;;  %v1177_v33 = vadd.f32 %v1176_v5, %v1175_v16 }
 0x188   : > { %v1123_v34 = vsel %vm1075_vm2, %v1112_v4, %v1122_v26  ;;  %v1180_v37 = vrot.slane %v1177_v33, 7  ;;  %v1193_v38 = vmul.f32 %v1149_v32, %v1980_v20  ;;  %v1211_v49 = vmul.f32 %v1153_v1, %v1149_v32 }
 0x189   : > { %v1125_v36 = vsub.f32 %v1081_v17, %v1123_v34 }
 0x18a   : > { %v1196_v41 = vrot.slane %v1193_v38, 7  ;;  %v1181_v42 = vsel %vm1075_vm2, %v1170_v22, %v1180_v37  ;;  %v1214_v58 = vrot.slane %v1211_v49, 7 }
 0x18b   : > { %v1191_v39 = vmul.f32 %v1189_v53, %v1125_v36  ;;  %v1183_v44 = vsub.f32 %v1664_v12, %v1181_v42  ;;  %v1224_v2 = vmul.f32 %v1222_v60, %v1125_v36 }
 0x18c   : > { %v1197_v8 = vsel %vm1075_vm2, %v1192_v25, %v1196_v41  ;;  %v1215_v7 = vsel %vm1075_vm2, %v1210_v57, %v1214_v58 }
 0x18d   : > { %v1199_v43 = vsub.f32 %v1191_v39, %v1197_v8  ;;  %v1227_v3 = vperm.slane %v1183_v44, 1  ;;  %v1226_v50 = vperm.slane %v1183_v44, 0  ;;  %v1209_v12 = vmul.f32 %v1189_v53, %v1183_v44 }
 0x18f   : > { %v1200_v45 = vand.u32 2147483647, %v1199_v43  ;;  %vm1202_vm5 = vcmp.lt.f32.partialorder %v1199_v43, 0.0  ;;  %v1231_v48 = vmul.f32 %v1227_v3, %v1980_v20  ;;  %v1230_v59 = vmul.f32 %v1226_v50, %v1952_v54 }
 0x190   : > { %v1217_v1 = vsub.f32 %v1209_v12, %v1215_v7 }
 0x191   : > { %v1201_v46 = vmax.f32 %v1200_v45, 1e-20  ;;  %v1234_v29 = vrot.slane %v1231_v48, 7 }
 0x193   : > { %v1203_v47 = vsub.f32 0.0, %v1201_v46  ;;  %v1235_v61 = vsel %vm1075_vm2, %v1230_v59, %v1234_v29 }
 0x194   : > { %v1237_v52 = vsub.f32 %v1224_v2, %v1235_v61 }
 0x195   : > { %v1204_v56 = vsel %vm1202_vm5, %v1203_v47, %v1201_v46 }
 0x196   : > { %1503 = vrcp.f32 %v1204_v56 }
 0x19c   : > { %v1504_v51 = vpop.eup %1503 }
 0x19d   : > { %v1206_v14 = vmul.f32 %v1504_v51, %v1204_v56 }
 0x19f   : > { %v1207_v40 = vsub.f32 2.0, %v1206_v14 }
 0x1a1   : > { %v1208_v9 = vmul.f32 %v1504_v51, %v1207_v40 }
 0x1a3   : > { %v1218_v10 = vmul.f32 %v1217_v1, %v1208_v9  ;;  %v1238_v0 = vmul.f32 %v1237_v52, %v1208_v9 }
 0x1a5   : > { %v1240_v15 = vperm.slane %v1218_v10, 0  ;;  %v1241_v16 = vperm.slane %v1218_v10, 1  ;;  %v1256_v17 = vperm.slane %v1238_v0, 1  ;;  %v1255_v19 = vperm.slane %v1238_v0, 0 }
 0x1a6   : > { %v1269_v13 = vmul.f32 -0.873, %v1218_v10  ;;  %v1270_v18 = vmul.f32 -0.4604, %v1238_v0  ;;  %v1272_v25 = vmul.f32 0.1, %v1238_v0 }
 0x1a7   : > { %v1244_v23 = vmul.f32 %v1240_v15, %v1952_v54  ;;  %v1245_v21 = vmul.f32 %v1241_v16, %v1980_v20  ;;  %v1260_v5 = vmul.f32 %v1256_v17, %v1982_v31  ;;  %v1259_v4 = vmul.f32 %v1255_v19, %v1954_v55 }
 0x1a8   : > { %v1271_v11 = vadd.f32 %v1270_v18, %v1269_v13  ;;  %v1274_v48 = vperm.slane %v1272_v25, 0 }
 0x1a9   : > { %v1248_v26 = vrot.slane %v1244_v23, 4  ;;  %v1249_v27 = vrot.slane %v1245_v21, 4  ;;  %v1264_v33 = vrot.slane %v1260_v5, 4  ;;  %v1263_v35 = vrot.slane %v1259_v4, 4 }
 0x1aa   : > { %1335 = vst.msk [vmem:[%s1966_s25] ss:$4 sm:$0x3] %vm1961_vm4, %v1271_v11  ;;  %v1278_v59 = vadd.f32 %v1274_v48, %v1936_v63 }
 0x1ab   : > { %v1252_v30 = vsub.f32 %v1971_v6, %v1248_v26  ;;  %v1253_v32 = vsub.f32 %v1984_v24, %v1249_v27  ;;  %v1275_v24 = vperm.slane %v1272_v25, 1 }
 0x1ad   : > { %v1268_v34 = vsub.f32 %v1253_v32, %v1264_v33  ;;  %v1267_v54 = vsub.f32 %v1252_v30, %v1263_v35  ;;  %v1279_v3 = vadd.f32 %v1275_v24, %v1940_v28 }
 0x1af   : > { %v1281_v36 = vmul.f32 0.1, %v1268_v34  ;;  %v1280_v20 = vmul.f32 0.1, %v1267_v54  ;;  %v1292_v29 = vrot.slane %v1279_v3, 7 }
 0x1b1   : > { %v1285_v37 = vrot.slane %v1281_v36, 4  ;;  %v1284_v31 = vrot.slane %v1280_v20, 4  ;;  %v1293_v12 = vsel %vm1075_vm2, %v1278_v59, %v1292_v29 }
 0x1b2   : > { %v1295_v61 = vmul.f32 %v1293_v12, %v1238_v0 }
 0x1b3   : > { %v1289_v55 = vadd.f32 %v1285_v37, %v1940_v28  ;;  %v1288_v38 = vadd.f32 %v1284_v31, %v1936_v63 }
 0x1b5   : > { %v1299_v22 = vrot.slane %v1289_v55, 4  ;;  %v1298_v53 = vrot.slane %v1288_v38, 4 }
 0x1b7   : > { %v1303_v39 = vmul.f32 %v1299_v22, %v1268_v34  ;;  %v1302_v41 = vmul.f32 %v1298_v53, %v1267_v54 }
 0x1b9   : > { %v1307_v6 = vrot.slane %v1303_v39, 5  ;;  %v1306_v42 = vrot.slane %v1302_v41, 5 }
 0x1bb   : > { %v1317_v8 = vsel %vm1105_vm3, %v1307_v6, 0.0  ;;  %v1310_v43 = vsel %vm1105_vm3, %v1306_v42, 0.0 }
 0x1bc   : > { %v1318_v44 = vrot.slane %v1317_v8, 4  ;;  %v1311_v45 = vrot.slane %v1310_v43, 4 }
 0x1be   : > { %v1319_v46 = vadd.f32 %v1318_v44, %v1317_v8  ;;  %v1312_v47 = vadd.f32 %v1311_v45, %v1310_v43 }
 0x1c0   : > { %v1320_v56 = vrot.slane %v1319_v46, 2  ;;  %v1313_v49 = vrot.slane %v1312_v47, 2 }
 0x1c2   : > { %v1321_v50 = vadd.f32 %v1320_v56, %v1319_v46  ;;  %v1314_v51 = vadd.f32 %v1313_v49, %v1312_v47 }
 0x1c4   : > { %v1322_v58 = vrot.slane %v1321_v50, 1  ;;  %v1315_v14 = vrot.slane %v1314_v51, 1 }
 0x1c6   : > { %v1323_v57 = vadd.f32 %v1322_v58, %v1321_v50  ;;  %v1316_v28 = vadd.f32 %v1315_v14, %v1314_v51 }
 0x1c8   : > { %v1326_v60 = vrot.slane %v1323_v57, 7 }
 0x1ca   : > { %v1327_v40 = vsel %vm1075_vm2, %v1316_v28, %v1326_v60 }
 0x1cb   : > { %v1329_v63 = vadd.f32 %v1327_v40, %v1295_v61 }
 0x1cd   : > { %v1330_v2 = vand.u32 2147483647, %v1329_v63 }
 0x1cf   : > { %1425 = vst.msk [vmem:[%s1966_s25 + $0x2] ss:$4 sm:$0x3] %vm1961_vm4, %v1330_v2 }
 0x1d0   : > { %1532 = shalt.err (!%p1529_p3)
}
 0x1d1   : > { %1432 = dma.vmem_to_hbm [thread:$0]  (%p1631_p5), %s1355_s30, 128, %s1357_s4, %s1341_s16  }
 0x1d2 PF: > { %p1438_p4 = scmp.ge.s32.totalorder %s1567_s15, 2  ;;  %s1368_s17 = sand.u32 1, %s1555_s12  }
 0x1d3   : > { %s1369_s19 = scalar_lea.sflag [#allocation3], %s1368_s17 }
 0x1d4   : > { %p1435_p7 = pnand %p1438_p4, %p1635_p6 }
 0x1d6   : > { %p1436_p8 = pneg %p1435_p7 }
 0x1d8   : > { %1550 = dma.done.wait (%p1436_p8), %s1369_s19, 128  }
 0x1d9   : > { %1552 = vsyncadd (%p1436_p8), %s1369_s19, 4294967168  ;;  %p13_p9 = scmp.ge.s32.totalorder %s1618_s18, 4   ;;  %s2077_s12 = smov %s1559_s13 }
 0x1da   : > { %s2078_s13 = smov %s1563_s14  ;;  %s2079_s14 = smov %s1629_s21 }
 0x1db   : > { %s2080_s15 = smov %s1618_s18  ;;  %15 = sbr.rel (!%p13_p9) target bundleno = 3 (0x3), region = 71 }
 0x1e0   :  { %1375 = vsyncpa [#allocation3], 1 }
 0x1e1   :  { %1377 = vsyncpa [#allocation3 + $0x1], 1 }

</bundles_post_ra>
